<compile_context>
chip_gen: v7x
topology: tpu7x:2x2x1
jax: 0.10.0
libtpu: 0.0.40
codegen_flags: <defaults>
</compile_context>

<pallas_src>
import functools

import jax
import jax.numpy as jnp
from jax import lax
from jax.experimental import pallas as pl
from jax.experimental.pallas import tpu as pltpu


def _conv_module_kernel(x_ref, m_ref, w1_ref, w2_ref, o_ref, s1_ref, s2_ref,
                        *, W, slot_in, slot_out):
    """One batch-block per grid step.

    x_ref  : (slot_in, L)   Cin channels + a ones row (bias lane) + zero pad,
                            pixels image-major on lanes, L = batch_block*H*W
    m_ref  : (9, L)         per-tap SAME-padding validity masks (precomputed)
    w1_ref : (slot_out, 9*slot_in)           conv1 weights * BN1 scale, b1 folded
    w2_ref : (Cout, 9*slot_out + slot_in)    conv2 weights * BN2 scale, residual
                                             Linear weight and (b2+blin) folded
    o_ref  : (Cout, L)
    s1/s2  : VMEM scratch holding the stacked (rolled+masked) matmul operands
    """
    L = o_ref.shape[1]
    x = x_ref[...]                                   # (slot_in, L)
    offs = [dh * W + dw for dh in (-1, 0, 1) for dw in (-1, 0, 1)]

    # ---- conv1 (+BN1 folded, bias via the ones row): 9 taps -> one K=72 dot
    for t, off in enumerate(offs):
        if off == 0:                                 # centre tap: always valid
            v = x
        else:
            v = pltpu.roll(x, shift=(-off) % L, axis=1) * m_ref[pl.ds(t, 1), :]
        s1_ref[pl.ds(t * slot_in, slot_in), :] = v
    y1 = jnp.maximum(
        jnp.dot(w1_ref[...], s1_ref[...],
                preferred_element_type=jnp.float32,
                precision=lax.Precision.HIGHEST), 0.0)   # (slot_out, L), ReLU

    # ---- conv2 (+BN2) + residual Linear + biases: all in one K=80 dot
    for t, off in enumerate(offs):
        if off == 0:
            v = y1
        else:
            v = pltpu.roll(y1, shift=(-off) % L, axis=1) * m_ref[pl.ds(t, 1), :]
        s2_ref[pl.ds(t * slot_out, slot_out), :] = v
    s2_ref[pl.ds(9 * slot_out, slot_in), :] = x      # residual input (+ ones row)
    o_ref[...] = jnp.maximum(
        jnp.dot(w2_ref[...], s2_ref[...],
                preferred_element_type=jnp.float32,
                precision=lax.Precision.HIGHEST), 0.0)


@functools.partial(jax.jit, static_argnames=("batch_block",))
def conv_module_forward(x_nchw, params, batch_block=None):
    """x_nchw: (N, Cin, H, W) float32; params: folded weights (see make_params)."""
    N, Cin, H, W = x_nchw.shape
    HW = H * W
    slot_out, k1 = params["w1c"].shape
    slot_in = k1 // 9
    cout = params["w2c"].shape[0]
    assert Cin + 1 <= slot_in and params["w2c"].shape[1] == 9 * slot_out + slot_in

    # --- pick images-per-block: target ~512 lanes, keep >=2 grid steps if we can
    if batch_block is None:
        nb = max(1, min(N, max(1, 512 // HW)))
        if N >= 2:
            nb = min(nb, N // 2)        # keep grid >= 2 (v7x megacore sharding)
        while N % nb:
            nb -= 1
        batch_block = nb
    NB = batch_block
    assert N % NB == 0
    Lb = NB * HW

    # NCHW -> (slot_in, N*HW): channels on sublanes, then a ones row (bias lane),
    # then zero padding; pixels image-major on lanes.
    x2d = jnp.transpose(x_nchw, (1, 0, 2, 3)).reshape(Cin, N * HW)
    rows = [x2d, jnp.ones((1, N * HW), jnp.float32)]
    if slot_in > Cin + 1:
        rows.append(jnp.zeros((slot_in - Cin - 1, N * HW), jnp.float32))
    x_pad = jnp.concatenate(rows, axis=0)                     # (slot_in, N*HW)

    # SAME-padding validity masks, built once (outside the kernel body), period HW.
    hh = jnp.arange(HW, dtype=jnp.int32) // W
    ww = jnp.arange(HW, dtype=jnp.int32) % W
    masks = []
    for dh in (-1, 0, 1):
        for dw in (-1, 0, 1):
            valid = ((hh + dh >= 0) & (hh + dh < H) &
                     (ww + dw >= 0) & (ww + dw < W))
            masks.append(valid.astype(jnp.float32))
    mask_blk = jnp.tile(jnp.stack(masks, axis=0), (1, NB))    # (9, Lb)

    out2d = pl.pallas_call(
        functools.partial(_conv_module_kernel,
                          W=W, slot_in=slot_in, slot_out=slot_out),
        out_shape=jax.ShapeDtypeStruct((cout, N * HW), jnp.float32),
        grid_spec=pltpu.PrefetchScalarGridSpec(
            num_scalar_prefetch=0,
            grid=(N // NB,),
            in_specs=[
                pl.BlockSpec((slot_in, Lb), lambda b: (0, b)),
                pl.BlockSpec((9, Lb), lambda b: (0, 0)),
                pl.BlockSpec((slot_out, 9 * slot_in), lambda b: (0, 0)),
                pl.BlockSpec((cout, 9 * slot_out + slot_in), lambda b: (0, 0)),
            ],
            out_specs=pl.BlockSpec((cout, Lb), lambda b: (0, b)),
            scratch_shapes=[
                pltpu.VMEM((9 * slot_in, Lb), jnp.float32),
                pltpu.VMEM((9 * slot_out + slot_in, Lb), jnp.float32),
            ],
        ),
        compiler_params=pltpu.CompilerParams(
            dimension_semantics=("parallel",)),   # batch blocks are independent
    )(x_pad, mask_blk, params["w1c"], params["w2c"])

    # (Cout, N*H*W) -> (N, Cout, H, W)
    return jnp.transpose(out2d.reshape(cout, N, H, W), (1, 0, 2, 3))


def make_params(key, cin, cout, eps=1e-5):
    """Deterministic synthetic parameters.

    Returns (kernel_params, raw_params):
      kernel_params: w1c (slot_out, 72) and w2c (cout, 80) combined matmul
                     weights with BN scales, conv/BN/Linear biases and the
                     residual Linear weight all folded in.
      raw_params:    unfolded weights/BN stats for the pure-JAX reference.
    """
    ks = jax.random.split(key, 14)
    # conv weights in PyTorch OIHW
    w1_oihw = jax.random.normal(ks[0], (cout, cin, 3, 3), jnp.float32) * 0.1
    cb1 = jax.random.normal(ks[1], (cout,), jnp.float32) * 0.1
    w2_oihw = jax.random.normal(ks[2], (cout, cout, 3, 3), jnp.float32) * 0.1
    cb2 = jax.random.normal(ks[3], (cout,), jnp.float32) * 0.1
    # BN params / running stats (eval mode)
    g1 = 1.0 + 0.1 * jax.random.normal(ks[4], (cout,), jnp.float32)
    be1 = 0.1 * jax.random.normal(ks[5], (cout,), jnp.float32)
    m1 = 0.1 * jax.random.normal(ks[6], (cout,), jnp.float32)
    v1 = jnp.abs(jax.random.normal(ks[7], (cout,), jnp.float32)) + 0.5
    g2 = 1.0 + 0.1 * jax.random.normal(ks[8], (cout,), jnp.float32)
    be2 = 0.1 * jax.random.normal(ks[9], (cout,), jnp.float32)
    m2 = 0.1 * jax.random.normal(ks[10], (cout,), jnp.float32)
    v2 = jnp.abs(jax.random.normal(ks[11], (cout,), jnp.float32)) + 0.5
    # residual Linear (PyTorch (out, in) weight; y = x @ W.T + b)
    wlin = jax.random.normal(ks[12], (cout, cin), jnp.float32) * 0.1
    blin = jax.random.normal(ks[13], (cout,), jnp.float32) * 0.1

    s1 = g1 / jnp.sqrt(v1 + eps)
    b1 = be1 + (cb1 - m1) * s1
    s2 = g2 / jnp.sqrt(v2 + eps)
    b2 = be2 + (cb2 - m2) * s2

    # 8-sublane-aligned tap slots; input slot reserves one extra row for the
    # ones (bias) channel appended to x on the host side.
    slot_in = ((cin + 1 + 7) // 8) * 8
    slot_out = ((cout + 7) // 8) * 8

    # conv1 combined weight (slot_out, 9*slot_in): per-tap (kh*3+kw) slots of
    # the OIHW weight * BN1 scale; b1 sits on the ones row of the centre tap.
    w1_taps = jnp.transpose(w1_oihw, (2, 3, 0, 1)).reshape(9, cout, cin)
    w1_taps = w1_taps * s1[None, :, None]
    w1_slots = jnp.zeros((9, slot_out, slot_in), jnp.float32)
    w1_slots = w1_slots.at[:, :cout, :cin].set(w1_taps)
    w1_slots = w1_slots.at[4, :cout, cin].set(b1)          # centre tap, ones row
    w1c = jnp.transpose(w1_slots, (1, 0, 2)).reshape(slot_out, 9 * slot_in)

    # conv2 combined weight (cout, 9*slot_out + slot_in): 9 tap slots * BN2
    # scale, then the residual Linear weight and (b2 + blin) on the ones row.
    w2_taps = jnp.transpose(w2_oihw, (2, 3, 0, 1)).reshape(9, cout, cout)
    w2_taps = w2_taps * s2[None, :, None]
    w2_slots = jnp.zeros((9, cout, slot_out), jnp.float32)
    w2_slots = w2_slots.at[:, :, :cout].set(w2_taps)
    w2_conv = jnp.transpose(w2_slots, (1, 0, 2)).reshape(cout, 9 * slot_out)
    res_cols = jnp.zeros((cout, slot_in), jnp.float32)
    res_cols = res_cols.at[:, :cin].set(wlin)
    res_cols = res_cols.at[:, cin].set(b2 + blin)
    w2c = jnp.concatenate([w2_conv, res_cols], axis=1)

    params = {"w1c": w1c, "w2c": w2c}
    raw = {
        "w1_hwio": jnp.transpose(w1_oihw, (2, 3, 1, 0)), "cb1": cb1,
        "g1": g1, "be1": be1, "m1": m1, "v1": v1,
        "w2_hwio": jnp.transpose(w2_oihw, (2, 3, 1, 0)), "cb2": cb2,
        "g2": g2, "be2": be2, "m2": m2, "v2": v2,
        "wlin": wlin, "blin": blin,
    }
    return params, raw


def _reference(x_nchw, raw, eps=1e-5):
    """Pure-JAX reference using the UNFOLDED parameters (validates folding too)."""
    x = jnp.transpose(x_nchw, (0, 2, 3, 1))  # NHWC
    dn = ("NHWC", "HWIO", "NHWC")
    y = lax.conv_general_dilated(x, raw["w1_hwio"], (1, 1), "SAME",
                                 dimension_numbers=dn) + raw["cb1"]
    y = (y - raw["m1"]) / jnp.sqrt(raw["v1"] + eps) * raw["g1"] + raw["be1"]
    y = jnp.maximum(y, 0.0)
    y = lax.conv_general_dilated(y, raw["w2_hwio"], (1, 1), "SAME",
                                 dimension_numbers=dn) + raw["cb2"]
    y = (y - raw["m2"]) / jnp.sqrt(raw["v2"] + eps) * raw["g2"] + raw["be2"]
    res = jnp.einsum("nhwc,dc->nhwd", x, raw["wlin"]) + raw["blin"]
    out = jnp.maximum(y + res, 0.0)
    return jnp.transpose(out, (0, 3, 1, 2))


if __name__ == "__main__":
    key = jax.random.PRNGKey(0)
    kx, kp = jax.random.split(key)

    N, Cin, Cout, H, W = 2, 4, 8, 16, 16
    x = jax.random.normal(kx, (N, Cin, H, W), jnp.float32)
    params, raw = make_params(kp, Cin, Cout)

    out = conv_module_forward(x, params)      # auto batch_block (keeps grid >= 2)
    out = jax.block_until_ready(out)

    ref = _reference(x, raw)
    assert out.shape == (N, Cout, H, W)
    max_err = float(jnp.max(jnp.abs(out - ref)))
    assert jnp.allclose(out, ref, atol=2e-4, rtol=2e-4), max_err

    print("KERNEL_OK")
</pallas_src>

<mosaic_0001>
module attributes {stable_mosaic.version = 11 : i64} {
  func.func @_conv_module_kernel(%arg0: i32, %arg1: memref<8x256xf32, #tpu.memory_space<vmem>>, %arg2: memref<9x256xf32, #tpu.memory_space<vmem>>, %arg3: memref<8x72xf32, #tpu.memory_space<vmem>>, %arg4: memref<8x80xf32, #tpu.memory_space<vmem>>, %arg5: memref<8x256xf32, #tpu.memory_space<vmem>>, %arg6: memref<72x256xf32, #tpu.memory_space<vmem>>, %arg7: memref<80x256xf32, #tpu.memory_space<vmem>>) attributes {dimension_semantics = [#tpu.dimension_semantics<parallel>], iteration_bounds = array<i64: 2>, scalar_prefetch = 0 : i64, scratch_operands = 2 : i64, tpu.core_type = #tpu.core_type<tc>, window_params = [{transform_indices = @transform_0, window_bounds = array<i64: 8, 256>}, {pipeline_mode = #tpu.pipeline_mode<synchronous>, transform_indices = @transform_1, window_bounds = array<i64: 9, 256>}, {pipeline_mode = #tpu.pipeline_mode<synchronous>, transform_indices = @transform_2, window_bounds = array<i64: 8, 72>}, {pipeline_mode = #tpu.pipeline_mode<synchronous>, transform_indices = @transform_3, window_bounds = array<i64: 8, 80>}, {transform_indices = @transform_4, window_bounds = array<i64: 8, 256>}]} {
    %c0 = arith.constant 0 : index
    %c0_0 = arith.constant 0 : index
    %0 = vector.load %arg1[%c0, %c0_0] : memref<8x256xf32, #tpu.memory_space<vmem>>, vector<8x256xf32>
    %c17_i32 = arith.constant 17 : i32
    %1 = tpu.dynamic_rotate %0 by %c17_i32 dim 1 : vector<8x256xf32>, i32 -> vector<8x256xf32>
    %c0_1 = arith.constant 0 : index
    %c0_2 = arith.constant 0 : index
    %2 = vector.load %arg2[%c0_1, %c0_2] : memref<9x256xf32, #tpu.memory_space<vmem>>, vector<1x256xf32>
    %3 = vector.broadcast %2 : vector<1x256xf32> to vector<8x256xf32>
    %4 = arith.mulf %1, %3 : vector<8x256xf32>
    %c0_3 = arith.constant 0 : index
    %c0_4 = arith.constant 0 : index
    %5 = vector.load %arg6[%c0_3, %c0_4] : memref<72x256xf32, #tpu.memory_space<vmem>>, vector<8x256xf32>
    tpu.vector_store %arg6[%c0_3, %c0_4], %4 {strides = array<i32>} : memref<72x256xf32, #tpu.memory_space<vmem>>, vector<8x256xf32>,
    %c16_i32 = arith.constant 16 : i32
    %6 = tpu.dynamic_rotate %0 by %c16_i32 dim 1 : vector<8x256xf32>, i32 -> vector<8x256xf32>
    %c1 = arith.constant 1 : index
    %c0_5 = arith.constant 0 : index
    %7 = vector.load %arg2[%c1, %c0_5] : memref<9x256xf32, #tpu.memory_space<vmem>>, vector<1x256xf32>
    %8 = vector.broadcast %7 : vector<1x256xf32> to vector<8x256xf32>
    %9 = arith.mulf %6, %8 : vector<8x256xf32>
    %c8 = arith.constant 8 : index
    %c0_6 = arith.constant 0 : index
    %10 = vector.load %arg6[%c8, %c0_6] : memref<72x256xf32, #tpu.memory_space<vmem>>, vector<8x256xf32>
    tpu.vector_store %arg6[%c8, %c0_6], %9 {strides = array<i32>} : memref<72x256xf32, #tpu.memory_space<vmem>>, vector<8x256xf32>,
    %c15_i32 = arith.constant 15 : i32
    %11 = tpu.dynamic_rotate %0 by %c15_i32 dim 1 : vector<8x256xf32>, i32 -> vector<8x256xf32>
    %c2 = arith.constant 2 : index
    %c0_7 = arith.constant 0 : index
    %12 = vector.load %arg2[%c2, %c0_7] : memref<9x256xf32, #tpu.memory_space<vmem>>, vector<1x256xf32>
    %13 = vector.broadcast %12 : vector<1x256xf32> to vector<8x256xf32>
    %14 = arith.mulf %11, %13 : vector<8x256xf32>
    %c16 = arith.constant 16 : index
    %c0_8 = arith.constant 0 : index
    %15 = vector.load %arg6[%c16, %c0_8] : memref<72x256xf32, #tpu.memory_space<vmem>>, vector<8x256xf32>
    tpu.vector_store %arg6[%c16, %c0_8], %14 {strides = array<i32>} : memref<72x256xf32, #tpu.memory_space<vmem>>, vector<8x256xf32>,
    %c1_i32 = arith.constant 1 : i32
    %16 = tpu.dynamic_rotate %0 by %c1_i32 dim 1 : vector<8x256xf32>, i32 -> vector<8x256xf32>
    %c3 = arith.constant 3 : index
    %c0_9 = arith.constant 0 : index
    %17 = vector.load %arg2[%c3, %c0_9] : memref<9x256xf32, #tpu.memory_space<vmem>>, vector<1x256xf32>
    %18 = vector.broadcast %17 : vector<1x256xf32> to vector<8x256xf32>
    %19 = arith.mulf %16, %18 : vector<8x256xf32>
    %c24 = arith.constant 24 : index
    %c0_10 = arith.constant 0 : index
    %20 = vector.load %arg6[%c24, %c0_10] : memref<72x256xf32, #tpu.memory_space<vmem>>, vector<8x256xf32>
    tpu.vector_store %arg6[%c24, %c0_10], %19 {strides = array<i32>} : memref<72x256xf32, #tpu.memory_space<vmem>>, vector<8x256xf32>,
    %c32 = arith.constant 32 : index
    %c0_11 = arith.constant 0 : index
    %21 = vector.load %arg6[%c32, %c0_11] : memref<72x256xf32, #tpu.memory_space<vmem>>, vector<8x256xf32>
    tpu.vector_store %arg6[%c32, %c0_11], %0 {strides = array<i32>} : memref<72x256xf32, #tpu.memory_space<vmem>>, vector<8x256xf32>,
    %c255_i32 = arith.constant 255 : i32
    %22 = tpu.dynamic_rotate %0 by %c255_i32 dim 1 : vector<8x256xf32>, i32 -> vector<8x256xf32>
    %c5 = arith.constant 5 : index
    %c0_12 = arith.constant 0 : index
    %23 = vector.load %arg2[%c5, %c0_12] : memref<9x256xf32, #tpu.memory_space<vmem>>, vector<1x256xf32>
    %24 = vector.broadcast %23 : vector<1x256xf32> to vector<8x256xf32>
    %25 = arith.mulf %22, %24 : vector<8x256xf32>
    %c40 = arith.constant 40 : index
    %c0_13 = arith.constant 0 : index
    %26 = vector.load %arg6[%c40, %c0_13] : memref<72x256xf32, #tpu.memory_space<vmem>>, vector<8x256xf32>
    tpu.vector_store %arg6[%c40, %c0_13], %25 {strides = array<i32>} : memref<72x256xf32, #tpu.memory_space<vmem>>, vector<8x256xf32>,
    %c241_i32 = arith.constant 241 : i32
    %27 = tpu.dynamic_rotate %0 by %c241_i32 dim 1 : vector<8x256xf32>, i32 -> vector<8x256xf32>
    %c6 = arith.constant 6 : index
    %c0_14 = arith.constant 0 : index
    %28 = vector.load %arg2[%c6, %c0_14] : memref<9x256xf32, #tpu.memory_space<vmem>>, vector<1x256xf32>
    %29 = vector.broadcast %28 : vector<1x256xf32> to vector<8x256xf32>
    %30 = arith.mulf %27, %29 : vector<8x256xf32>
    %c48 = arith.constant 48 : index
    %c0_15 = arith.constant 0 : index
    %31 = vector.load %arg6[%c48, %c0_15] : memref<72x256xf32, #tpu.memory_space<vmem>>, vector<8x256xf32>
    tpu.vector_store %arg6[%c48, %c0_15], %30 {strides = array<i32>} : memref<72x256xf32, #tpu.memory_space<vmem>>, vector<8x256xf32>,
    %c240_i32 = arith.constant 240 : i32
    %32 = tpu.dynamic_rotate %0 by %c240_i32 dim 1 : vector<8x256xf32>, i32 -> vector<8x256xf32>
    %c7 = arith.constant 7 : index
    %c0_16 = arith.constant 0 : index
    %33 = vector.load %arg2[%c7, %c0_16] : memref<9x256xf32, #tpu.memory_space<vmem>>, vector<1x256xf32>
    %34 = vector.broadcast %33 : vector<1x256xf32> to vector<8x256xf32>
    %35 = arith.mulf %32, %34 : vector<8x256xf32>
    %c56 = arith.constant 56 : index
    %c0_17 = arith.constant 0 : index
    %36 = vector.load %arg6[%c56, %c0_17] : memref<72x256xf32, #tpu.memory_space<vmem>>, vector<8x256xf32>
    tpu.vector_store %arg6[%c56, %c0_17], %35 {strides = array<i32>} : memref<72x256xf32, #tpu.memory_space<vmem>>, vector<8x256xf32>,
    %c239_i32 = arith.constant 239 : i32
    %37 = tpu.dynamic_rotate %0 by %c239_i32 dim 1 : vector<8x256xf32>, i32 -> vector<8x256xf32>
    %c8_18 = arith.constant 8 : index
    %c0_19 = arith.constant 0 : index
    %38 = vector.load %arg2[%c8_18, %c0_19] : memref<9x256xf32, #tpu.memory_space<vmem>>, vector<1x256xf32>
    %39 = vector.broadcast %38 : vector<1x256xf32> to vector<8x256xf32>
    %40 = arith.mulf %37, %39 : vector<8x256xf32>
    %c64 = arith.constant 64 : index
    %c0_20 = arith.constant 0 : index
    %41 = vector.load %arg6[%c64, %c0_20] : memref<72x256xf32, #tpu.memory_space<vmem>>, vector<8x256xf32>
    tpu.vector_store %arg6[%c64, %c0_20], %40 {strides = array<i32>} : memref<72x256xf32, #tpu.memory_space<vmem>>, vector<8x256xf32>,
    %c0_21 = arith.constant 0 : index
    %c0_22 = arith.constant 0 : index
    %42 = vector.load %arg3[%c0_21, %c0_22] : memref<8x72xf32, #tpu.memory_space<vmem>>, vector<8x72xf32>
    %c0_23 = arith.constant 0 : index
    %c0_24 = arith.constant 0 : index
    %43 = vector.load %arg6[%c0_23, %c0_24] : memref<72x256xf32, #tpu.memory_space<vmem>>, vector<72x256xf32>
    %cst = arith.constant dense<0.000000e+00> : vector<8x256xf32>
    %44 = tpu.matmul %42, %43, %cst {dimension_numbers = #tpu.dot_dimension_numbers<[1], [0], [0], [1], [0, 0, 1, 1], [], []>, precision = #tpu.contract_precision<fp32>} : vector<8x72xf32>, vector<72x256xf32>, vector<8x256xf32> -> vector<8x256xf32>
    %cst_25 = arith.constant 0.000000e+00 : f32
    %45 = vector.broadcast %cst_25 : f32 to vector<8x256xf32>
    %46 = arith.maximumf %44, %45 : vector<8x256xf32>
    %c17_i32_26 = arith.constant 17 : i32
    %47 = tpu.dynamic_rotate %46 by %c17_i32_26 dim 1 : vector<8x256xf32>, i32 -> vector<8x256xf32>
    %c0_27 = arith.constant 0 : index
    %c0_28 = arith.constant 0 : index
    %48 = vector.load %arg2[%c0_27, %c0_28] : memref<9x256xf32, #tpu.memory_space<vmem>>, vector<1x256xf32>
    %49 = vector.broadcast %48 : vector<1x256xf32> to vector<8x256xf32>
    %50 = arith.mulf %47, %49 : vector<8x256xf32>
    %c0_29 = arith.constant 0 : index
    %c0_30 = arith.constant 0 : index
    %51 = vector.load %arg7[%c0_29, %c0_30] : memref<80x256xf32, #tpu.memory_space<vmem>>, vector<8x256xf32>
    tpu.vector_store %arg7[%c0_29, %c0_30], %50 {strides = array<i32>} : memref<80x256xf32, #tpu.memory_space<vmem>>, vector<8x256xf32>,
    %c16_i32_31 = arith.constant 16 : i32
    %52 = tpu.dynamic_rotate %46 by %c16_i32_31 dim 1 : vector<8x256xf32>, i32 -> vector<8x256xf32>
    %c1_32 = arith.constant 1 : index
    %c0_33 = arith.constant 0 : index
    %53 = vector.load %arg2[%c1_32, %c0_33] : memref<9x256xf32, #tpu.memory_space<vmem>>, vector<1x256xf32>
    %54 = vector.broadcast %53 : vector<1x256xf32> to vector<8x256xf32>
    %55 = arith.mulf %52, %54 : vector<8x256xf32>
    %c8_34 = arith.constant 8 : index
    %c0_35 = arith.constant 0 : index
    %56 = vector.load %arg7[%c8_34, %c0_35] : memref<80x256xf32, #tpu.memory_space<vmem>>, vector<8x256xf32>
    tpu.vector_store %arg7[%c8_34, %c0_35], %55 {strides = array<i32>} : memref<80x256xf32, #tpu.memory_space<vmem>>, vector<8x256xf32>,
    %c15_i32_36 = arith.constant 15 : i32
    %57 = tpu.dynamic_rotate %46 by %c15_i32_36 dim 1 : vector<8x256xf32>, i32 -> vector<8x256xf32>
    %c2_37 = arith.constant 2 : index
    %c0_38 = arith.constant 0 : index
    %58 = vector.load %arg2[%c2_37, %c0_38] : memref<9x256xf32, #tpu.memory_space<vmem>>, vector<1x256xf32>
    %59 = vector.broadcast %58 : vector<1x256xf32> to vector<8x256xf32>
    %60 = arith.mulf %57, %59 : vector<8x256xf32>
    %c16_39 = arith.constant 16 : index
    %c0_40 = arith.constant 0 : index
    %61 = vector.load %arg7[%c16_39, %c0_40] : memref<80x256xf32, #tpu.memory_space<vmem>>, vector<8x256xf32>
    tpu.vector_store %arg7[%c16_39, %c0_40], %60 {strides = array<i32>} : memref<80x256xf32, #tpu.memory_space<vmem>>, vector<8x256xf32>,
    %c1_i32_41 = arith.constant 1 : i32
    %62 = tpu.dynamic_rotate %46 by %c1_i32_41 dim 1 : vector<8x256xf32>, i32 -> vector<8x256xf32>
    %c3_42 = arith.constant 3 : index
    %c0_43 = arith.constant 0 : index
    %63 = vector.load %arg2[%c3_42, %c0_43] : memref<9x256xf32, #tpu.memory_space<vmem>>, vector<1x256xf32>
    %64 = vector.broadcast %63 : vector<1x256xf32> to vector<8x256xf32>
    %65 = arith.mulf %62, %64 : vector<8x256xf32>
    %c24_44 = arith.constant 24 : index
    %c0_45 = arith.constant 0 : index
    %66 = vector.load %arg7[%c24_44, %c0_45] : memref<80x256xf32, #tpu.memory_space<vmem>>, vector<8x256xf32>
    tpu.vector_store %arg7[%c24_44, %c0_45], %65 {strides = array<i32>} : memref<80x256xf32, #tpu.memory_space<vmem>>, vector<8x256xf32>,
    %c32_46 = arith.constant 32 : index
    %c0_47 = arith.constant 0 : index
    %67 = vector.load %arg7[%c32_46, %c0_47] : memref<80x256xf32, #tpu.memory_space<vmem>>, vector<8x256xf32>
    tpu.vector_store %arg7[%c32_46, %c0_47], %46 {strides = array<i32>} : memref<80x256xf32, #tpu.memory_space<vmem>>, vector<8x256xf32>,
    %c255_i32_48 = arith.constant 255 : i32
    %68 = tpu.dynamic_rotate %46 by %c255_i32_48 dim 1 : vector<8x256xf32>, i32 -> vector<8x256xf32>
    %c5_49 = arith.constant 5 : index
    %c0_50 = arith.constant 0 : index
    %69 = vector.load %arg2[%c5_49, %c0_50] : memref<9x256xf32, #tpu.memory_space<vmem>>, vector<1x256xf32>
    %70 = vector.broadcast %69 : vector<1x256xf32> to vector<8x256xf32>
    %71 = arith.mulf %68, %70 : vector<8x256xf32>
    %c40_51 = arith.constant 40 : index
    %c0_52 = arith.constant 0 : index
    %72 = vector.load %arg7[%c40_51, %c0_52] : memref<80x256xf32, #tpu.memory_space<vmem>>, vector<8x256xf32>
    tpu.vector_store %arg7[%c40_51, %c0_52], %71 {strides = array<i32>} : memref<80x256xf32, #tpu.memory_space<vmem>>, vector<8x256xf32>,
    %c241_i32_53 = arith.constant 241 : i32
    %73 = tpu.dynamic_rotate %46 by %c241_i32_53 dim 1 : vector<8x256xf32>, i32 -> vector<8x256xf32>
    %c6_54 = arith.constant 6 : index
    %c0_55 = arith.constant 0 : index
    %74 = vector.load %arg2[%c6_54, %c0_55] : memref<9x256xf32, #tpu.memory_space<vmem>>, vector<1x256xf32>
    %75 = vector.broadcast %74 : vector<1x256xf32> to vector<8x256xf32>
    %76 = arith.mulf %73, %75 : vector<8x256xf32>
    %c48_56 = arith.constant 48 : index
    %c0_57 = arith.constant 0 : index
    %77 = vector.load %arg7[%c48_56, %c0_57] : memref<80x256xf32, #tpu.memory_space<vmem>>, vector<8x256xf32>
    tpu.vector_store %arg7[%c48_56, %c0_57], %76 {strides = array<i32>} : memref<80x256xf32, #tpu.memory_space<vmem>>, vector<8x256xf32>,
    %c240_i32_58 = arith.constant 240 : i32
    %78 = tpu.dynamic_rotate %46 by %c240_i32_58 dim 1 : vector<8x256xf32>, i32 -> vector<8x256xf32>
    %c7_59 = arith.constant 7 : index
    %c0_60 = arith.constant 0 : index
    %79 = vector.load %arg2[%c7_59, %c0_60] : memref<9x256xf32, #tpu.memory_space<vmem>>, vector<1x256xf32>
    %80 = vector.broadcast %79 : vector<1x256xf32> to vector<8x256xf32>
    %81 = arith.mulf %78, %80 : vector<8x256xf32>
    %c56_61 = arith.constant 56 : index
    %c0_62 = arith.constant 0 : index
    %82 = vector.load %arg7[%c56_61, %c0_62] : memref<80x256xf32, #tpu.memory_space<vmem>>, vector<8x256xf32>
    tpu.vector_store %arg7[%c56_61, %c0_62], %81 {strides = array<i32>} : memref<80x256xf32, #tpu.memory_space<vmem>>, vector<8x256xf32>,
    %c239_i32_63 = arith.constant 239 : i32
    %83 = tpu.dynamic_rotate %46 by %c239_i32_63 dim 1 : vector<8x256xf32>, i32 -> vector<8x256xf32>
    %c8_64 = arith.constant 8 : index
    %c0_65 = arith.constant 0 : index
    %84 = vector.load %arg2[%c8_64, %c0_65] : memref<9x256xf32, #tpu.memory_space<vmem>>, vector<1x256xf32>
    %85 = vector.broadcast %84 : vector<1x256xf32> to vector<8x256xf32>
    %86 = arith.mulf %83, %85 : vector<8x256xf32>
    %c64_66 = arith.constant 64 : index
    %c0_67 = arith.constant 0 : index
    %87 = vector.load %arg7[%c64_66, %c0_67] : memref<80x256xf32, #tpu.memory_space<vmem>>, vector<8x256xf32>
    tpu.vector_store %arg7[%c64_66, %c0_67], %86 {strides = array<i32>} : memref<80x256xf32, #tpu.memory_space<vmem>>, vector<8x256xf32>,
    %c72 = arith.constant 72 : index
    %c0_68 = arith.constant 0 : index
    %88 = vector.load %arg7[%c72, %c0_68] : memref<80x256xf32, #tpu.memory_space<vmem>>, vector<8x256xf32>
    tpu.vector_store %arg7[%c72, %c0_68], %0 {strides = array<i32>} : memref<80x256xf32, #tpu.memory_space<vmem>>, vector<8x256xf32>,
    %c0_69 = arith.constant 0 : index
    %c0_70 = arith.constant 0 : index
    %89 = vector.load %arg4[%c0_69, %c0_70] : memref<8x80xf32, #tpu.memory_space<vmem>>, vector<8x80xf32>
    %c0_71 = arith.constant 0 : index
    %c0_72 = arith.constant 0 : index
    %90 = vector.load %arg7[%c0_71, %c0_72] : memref<80x256xf32, #tpu.memory_space<vmem>>, vector<80x256xf32>
    %cst_73 = arith.constant dense<0.000000e+00> : vector<8x256xf32>
    %91 = tpu.matmul %89, %90, %cst_73 {dimension_numbers = #tpu.dot_dimension_numbers<[1], [0], [0], [1], [0, 0, 1, 1], [], []>, precision = #tpu.contract_precision<fp32>} : vector<8x80xf32>, vector<80x256xf32>, vector<8x256xf32> -> vector<8x256xf32>
    %cst_74 = arith.constant 0.000000e+00 : f32
    %92 = vector.broadcast %cst_74 : f32 to vector<8x256xf32>
    %93 = arith.maximumf %91, %92 : vector<8x256xf32>
    %c0_75 = arith.constant 0 : index
    %c0_76 = arith.constant 0 : index
    %94 = vector.load %arg5[%c0_75, %c0_76] : memref<8x256xf32, #tpu.memory_space<vmem>>, vector<8x256xf32>
    tpu.vector_store %arg5[%c0_75, %c0_76], %93 {strides = array<i32>} : memref<8x256xf32, #tpu.memory_space<vmem>>, vector<8x256xf32>,
    return
  }
  func.func @transform_0(%arg0: i32) -> (i32, i32) {
    %c0_i32 = arith.constant 0 : i32
    %c0_i32_0 = arith.constant 0 : i32
    return %c0_i32, %arg0 : i32, i32
  }
  func.func @transform_1(%arg0: i32) -> (i32, i32) {
    %c0_i32 = arith.constant 0 : i32
    %c0_i32_0 = arith.constant 0 : i32
    %c0_i32_1 = arith.constant 0 : i32
    return %c0_i32, %c0_i32_0 : i32, i32
  }
  func.func @transform_2(%arg0: i32) -> (i32, i32) {
    %c0_i32 = arith.constant 0 : i32
    %c0_i32_0 = arith.constant 0 : i32
    %c0_i32_1 = arith.constant 0 : i32
    return %c0_i32, %c0_i32_0 : i32, i32
  }
  func.func @transform_3(%arg0: i32) -> (i32, i32) {
    %c0_i32 = arith.constant 0 : i32
    %c0_i32_0 = arith.constant 0 : i32
    %c0_i32_1 = arith.constant 0 : i32
    return %c0_i32, %c0_i32_0 : i32, i32
  }
  func.func @transform_4(%arg0: i32) -> (i32, i32) {
    %c0_i32 = arith.constant 0 : i32
    %c0_i32_0 = arith.constant 0 : i32
    return %c0_i32, %arg0 : i32, i32
  }
}

</mosaic_0001>

<bundles_post_ra>
// kernel: conv_module_forward.1
= control target key start
LH: loop header
LB: loop body
LE: loop exit
PB: predicated region body
PF: predicated region fallthrough
CT: control target
= control target key end

     0   :  { %s2380_s15 = smov 0   ;;  %s3175_s0 = inlined_call_operand.vmem [shape: f32[8,512], index: 0, kind: input, shape index: {}]   ;;  %s3176_s1 = inlined_call_operand.vmem [shape: f32[9,256], index: 1, kind: input, shape index: {}]   ;;  %s3177_s2 = inlined_call_operand.vmem [shape: f32[8,72], index: 2, kind: input, shape index: {}]   ;;  %s3178_s3 = inlined_call_operand.vmem [shape: f32[8,80], index: 3, kind: input, shape index: {}]   ;;  %s3179_s4 = inlined_call_operand.vmem [shape: f32[8,512], index: 4, kind: output, shape index: {}]  }
   0x1 LB: > { %s2060_s16 = sadd.s32 4294967295, %s2344_s15   ;;  %p2064_p0 = scmp.ge.s32.totalorder %s2344_s15, 1  ;;  %s2344_s15 = sphi %s2380_s15, %s14_s15  }
   0x2   : > { %p163_p1 = scmp.lt.s32.totalorder %s2344_s15, 3 }
   0x4   : > { %p164_p2 = pnand %p2064_p0, %p163_p1 }
   0x6   : > { %167 = sbr.rel (%p164_p2) target bundleno = 947 (0x3b3), region = 36 }
   0xd   : > { %s2065_s17 = sshll.u32 %s2060_s16, 1  ;;  %s2346_s22 = smov 16   ;;  %v3190_v2 = vmov 0.0   ;;  %v207_v3 = vlaneseq  ;;  %v2069_v8 = vld [vmem:[%s3176_s1 + $0x1] ss:$8 sm:$0x3] }
   0xe   : > { %p190_p3 = scmp.lt.s32.totalorder %s2065_s17, 3  ;;  %s2347_s23 = smov 17   ;;  %503 = vmatprep.mubr.f32.mxu0 %v3190_v2  ;;  %1385 = vmatprep.mubr.f32.mxu1 %v3190_v2  ;;  %v212_v9 = vld [vmem:[%s3176_s1] ss:$8 sm:$0x3]  ;;  %vm417_vm2 = vcmask 588800  }
   0xf   : > { %s2348_s24 = smov 15   ;;  %s2349_s25 = smov 1   ;;  %v215_v4 = vshrl.u32 %v207_v3, 7  ;;  %v2434_v5 = vand.u32 127, %v207_v3  ;;  %v398_v28 = vld [vmem:[%s3177_s2] sm:$0xff]  ;;  %vm1297_vm9 = vcmask 654336  }
  0x10   : > { %s3230_s17 = smov (!%p190_p3, %s2065_s17), 3  ;;  %s2350_s26 = smov 127   ;;  %v2070_v18 = vld [vmem:[%s3176_s1 + $0x2] ss:$8 sm:$0x3]  ;;  %v419_v40 = vsel %vm417_vm2, %v398_v28, 0 }
  0x11   : > { %s2066_s18 = sshll.u32 %s3230_s17, 3  ;;  %s2351_s27 = smov 113   ;;  %v2436_v6 = vsub.s32 0, %v215_v4  ;;  %v2438_v7 = vsub.s32 1, %v215_v4  ;;  %vm232_vm0 = vcmp.lt.s32.totalorder %v2434_v5, 16  ;;  %vm209_vm1 = vcmp.lt.s32.totalorder %v2434_v5, 17 }
  0x12   : > { %s193_s21 = scalar_lea.vmem %s3175_s0, %s2066_s18  ;;  %s2352_s28 = smov 112   ;;  %v2071_v27 = vld [vmem:[%s3176_s1 + $0x3] ss:$8 sm:$0x3]  ;;  %vm256_vm3 = vcmp.lt.s32.totalorder %v2434_v5, 15  ;;  %vm280_vm4 = vcmp.lt.s32.totalorder %v2434_v5, 1 }
  0x13   : > { %v2396_v0 = vld [vmem:[%s193_s21] sm:$0xff]  ;;  %v2402_v1 = vld [vmem:[%s193_s21 + $0x8] sm:$0xff]  ;;  %s2354_s29 = smov 111   ;;  %v241_v12 = vrot.slane %v2069_v8, %v2436_v6  ;;  %v245_v13 = vrot.slane %v2069_v8, %v2438_v7  ;;  %v217_v14 = vrot.slane %v212_v9, %v2436_v6  ;;  %v221_v15 = vrot.slane %v212_v9, %v2438_v7  ;;  %s199_s30 = scalar_lea.vmem %s3179_s4, %s2066_s18 }
  0x14   : > { %228 = vrot.lane.b32.xlu1 %v2396_v0, %s2346_s22  ;;  %203 = vrot.lane.b32.xlu0 %v2396_v0, %s2347_s23  ;;  %v265_v29 = vrot.slane %v2070_v18, %v2436_v6  ;;  %v2072_v30 = vld [vmem:[%s3176_s1 + $0x5] ss:$8 sm:$0x3]  ;;  %v2479_v31 = vand.u32 4294901760, %v2402_v1  ;;  %v269_v38 = vrot.slane %v2070_v18, %v2438_v7  ;;  %v289_v39 = vrot.slane %v2071_v27, %v2436_v6 }
  0x15   : > { %v293_v43 = vrot.slane %v2071_v27, %v2438_v7  ;;  %vm306_vm5 = vcmp.lt.s32.totalorder %v2434_v5, 127  ;;  %v315_v46 = vrot.slane %v2072_v30, %v2436_v6  ;;  %v2501_v47 = vld [vmem:[%s3176_s1 + $0x6] ss:$8 sm:$0x3]  ;;  %v2504_v48 = vand.u32 4294901760, %v2396_v0 }
  0x16   : > { %v319_v51 = vrot.slane %v2072_v30, %v2438_v7  ;;  %vm330_vm6 = vcmp.lt.s32.totalorder %v2434_v5, 113  ;;  %v2510_v52 = vsub.f32 %v2402_v1, %v2479_v31  ;;  %v2515_v53 = vld [vmem:[%s3176_s1 + $0x7] ss:$8 sm:$0x3]  ;;  %v2517_v54 = vand.u32 4294901760, %v419_v40 }
  0x17   : > { %v339_v61 = vrot.slane %v2501_v47, %v2436_v6  ;;  %v343_v62 = vrot.slane %v2501_v47, %v2438_v7  ;;  %vm354_vm7 = vcmp.lt.s32.totalorder %v2434_v5, 112  ;;  %v363_v63 = vrot.slane %v2515_v53, %v2436_v6 }
  0x18   : > { %230 = vrot.lane.b32.xlu1 %v2402_v1, %s2346_s22  ;;  %205 = vrot.lane.b32.xlu0 %v2402_v1, %s2347_s23  ;;  %v2538_v3 = vsub.f32 %v2396_v0, %v2504_v48  ;;  %vm378_vm8 = vcmp.lt.s32.totalorder %v2434_v5, 111 }
  0x1c   : > { %254 = vrot.lane.b32.xlu1 %v2402_v1, %s2348_s24  ;;  %252 = vrot.lane.b32.xlu0 %v2396_v0, %s2348_s24 }
  0x20   : > { %278 = vrot.lane.b32.xlu1 %v2402_v1, %s2349_s25  ;;  %276 = vrot.lane.b32.xlu0 %v2396_v0, %s2349_s25 }
  0x24   : > { %304 = vrot.lane.b32.xlu1 %v2402_v1, %s2350_s26  ;;  %302 = vrot.lane.b32.xlu0 %v2396_v0, %s2350_s26 }
  0x28   : > { %328 = vrot.lane.b32.xlu1 %v2402_v1, %s2351_s27  ;;  %326 = vrot.lane.b32.xlu0 %v2396_v0, %s2351_s27 }
  0x2c   : > { %352 = vrot.lane.b32.xlu1 %v2402_v1, %s2352_s28  ;;  %350 = vrot.lane.b32.xlu0 %v2396_v0, %s2352_s28 }
  0x30   : > { %376 = vrot.lane.b32.xlu1 %v2402_v1, %s2354_s29  ;;  %374 = vrot.lane.b32.xlu0 %v2396_v0, %s2354_s29  ;;  %v367_v1 = vrot.slane %v2515_v53, %v2438_v7 }
  0x86   : > { %v229_v10 = vpop.permute.xlu1 %228  ;;  %v204_v11 = vpop.permute.xlu0 %203 }
  0x8a   : > { %v231_v16 = vpop.permute.xlu1 %230  ;;  %v206_v17 = vpop.permute.xlu0 %205 }
  0x8b   : > { %v233_v19 = vsel %vm232_vm0, %v229_v10, %v231_v16  ;;  %v234_v20 = vsel %vm232_vm0, %v231_v16, %v229_v10  ;;  %v210_v21 = vsel %vm209_vm1, %v204_v11, %v206_v17  ;;  %v211_v22 = vsel %vm209_vm1, %v206_v17, %v204_v11 }
  0x8c   : > { %v248_v23 = vmul.f32 %v241_v12, %v234_v20  ;;  %v2463_v24 = vmul.f32 %v245_v13, %v233_v19  ;;  %v2465_v25 = vmul.f32 %v217_v14, %v211_v22  ;;  %v225_v26 = vmul.f32 %v221_v15, %v210_v21  ;;  %v2557_v19 = vld [vmem:[%s3176_s1 + $0x10] ss:$8 sm:$0x3] }
  0x8d   : > { %v2541_v11 = vsub.f32 %v419_v40, %v2517_v54  ;;  %v2544_v12 = vand.u32 4294901760, %v2510_v52 }
  0x8e   : > { %v425_v32 = vand.u32 4294901760, %v2463_v24  ;;  %v427_v33 = vand.u32 4294901760, %v248_v23  ;;  %v421_v34 = vand.u32 4294901760, %v225_v26  ;;  %v423_v35 = vand.u32 4294901760, %v2465_v25  ;;  %v255_v36 = vpop.permute.xlu1 %254  ;;  %v253_v37 = vpop.permute.xlu0 %252 }
  0x8f   : > { %v257_v41 = vsel %vm256_vm3, %v253_v37, %v255_v36  ;;  %v258_v42 = vsel %vm256_vm3, %v255_v36, %v253_v37  ;;  %3203 = vst [vmem:[#allocation4_spill] sm:$0xff] %v2544_v12  ;;  %v3180_v36 = vand.u32 4294901760, %v2541_v11 }
  0x90   : > { %v2493_v44 = vpack.c.bf16 %v425_v32, %v421_v34  ;;  %v2495_v45 = vpack.c.bf16 %v427_v33, %v423_v35  ;;  %v2519_v55 = vmul.f32 %v265_v29, %v258_v42  ;;  %v273_v56 = vmul.f32 %v269_v38, %v257_v41 }
  0x91   : > { %v2551_v16 = vsub.f32 %v248_v23, %v427_v33  ;;  %v2559_v20 = vsub.f32 %v225_v26, %v421_v34  ;;  %v2562_v21 = vsub.f32 %v2465_v25, %v423_v35  ;;  %v2569_v23 = vsub.f32 %v2463_v24, %v425_v32 }
  0x92   : > { %v279_v49 = vpop.permute.xlu1 %278  ;;  %v277_v50 = vpop.permute.xlu0 %276  ;;  %2086 = vmatprep.subr.bf16.mxu0 %v2493_v44  ;;  %v429_v13 = vand.u32 4294901760, %v273_v56  ;;  %v431_v14 = vand.u32 4294901760, %v2519_v55  ;;  %v387_v26 = vrot.slane %v2557_v19, %v2436_v6  ;;  %v391_v25 = vrot.slane %v2557_v19, %v2438_v7 }
  0x93   : > { %v281_v57 = vsel %vm280_vm4, %v277_v50, %v279_v49  ;;  %v282_v58 = vsel %vm280_vm4, %v279_v49, %v277_v50  ;;  %2088 = vmatpush1.bf16.msra.mxu0 %v2495_v45  ;;  %v566_v34 = vsub.f32 %v2510_v52, %v2544_v12  ;;  %v2580_v24 = vand.u32 4294901760, %v2538_v3 }
  0x94   : > { %v296_v59 = vmul.f32 %v289_v39, %v282_v58  ;;  %v297_v60 = vmul.f32 %v293_v43, %v281_v57  ;;  %v3181_v32 = vand.u32 4294901760, %v2551_v16  ;;  %v523_v39 = vand.u32 4294901760, %v2562_v21 }
  0x95   : > { %3204 = vst [vmem:[#allocation5_spill] sm:$0xff] %v2580_v24  ;;  %v517_v42 = vand.u32 4294901760, %v2559_v20  ;;  %v2598_v43 = vsub.f32 %v273_v56, %v429_v13  ;;  %v529_v50 = vand.u32 4294901760, %v2569_v23 }
  0x96   : > { %v433_v4 = vand.u32 4294901760, %v297_v60  ;;  %v435_v8 = vand.u32 4294901760, %v296_v59  ;;  %v305_v9 = vpop.permute.xlu1 %304  ;;  %v303_v10 = vpop.permute.xlu0 %302 }
  0x97   : > { %v307_v15 = vsel %vm306_vm5, %v303_v10, %v305_v9  ;;  %v308_v0 = vsel %vm306_vm5, %v305_v9, %v303_v10  ;;  %v2624_v9 = vsub.f32 %v2519_v55, %v431_v14 }
  0x98   : > { %v322_v17 = vmul.f32 %v315_v46, %v307_v15  ;;  %v323_v18 = vmul.f32 %v319_v51, %v308_v0  ;;  %v2564_v22 = vpack.c.bf16 %v433_v4, %v429_v13  ;;  %v2566_v27 = vpack.c.bf16 %v435_v8, %v431_v14 }
  0x99   : > { %v2583_v35 = vsub.f32 %v297_v60, %v433_v4  ;;  %v2600_v46 = vsub.f32 %v296_v59, %v435_v8  ;;  %v2606_v51 = vsub.f32 %v2541_v11, %v3180_v36  ;;  %v530_v0 = vsub.f32 %v2569_v23, %v529_v50 }
  0x9a   : > { %v441_v28 = vand.u32 4294901760, %v323_v18  ;;  %v443_v29 = vand.u32 4294901760, %v322_v17  ;;  %v329_v30 = vpop.permute.xlu1 %328  ;;  %v327_v33 = vpop.permute.xlu0 %326  ;;  %2090 = vmatprep.subr.bf16.mxu0 %v2564_v22  ;;  %v3185_v36 = vand.u32 4294901760, %v2624_v9 }
  0x9b   : > { %v331_v37 = vsel %vm330_vm6, %v327_v33, %v329_v30  ;;  %v332_v38 = vsel %vm330_vm6, %v329_v30, %v327_v33  ;;  %2092 = vmatpush1.bf16.msra.mxu0 %v2566_v27  ;;  %v3182_v8 = vand.u32 4294901760, %v2583_v35  ;;  %v3184_v30 = vand.u32 4294901760, %v2600_v46 }
  0x9c   : > { %v2592_v40 = vpack.c.bf16 %v441_v28, %v2479_v31  ;;  %v2595_v41 = vpack.c.bf16 %v443_v29, %v2504_v48  ;;  %v346_v53 = vmul.f32 %v339_v61, %v331_v37  ;;  %v347_v57 = vmul.f32 %v343_v62, %v332_v38 }
  0x9d   : > { %v2613_v59 = vsub.f32 %v323_v18, %v441_v28  ;;  %v536_v61 = vsub.f32 %v2551_v16, %v3181_v32  ;;  %v524_v62 = vsub.f32 %v2562_v21, %v523_v39  ;;  %v3186_v18 = vand.u32 4294901760, %v2598_v43 }
  0x9e   : > { %v353_v47 = vpop.permute.xlu1 %352  ;;  %v351_v49 = vpop.permute.xlu0 %350  ;;  %2094 = vmatprep.subr.bf16.mxu0 %v2592_v40  ;;  %v445_v19 = vand.u32 4294901760, %v347_v57  ;;  %v447_v28 = vand.u32 4294901760, %v346_v53  ;;  %v2638_v33 = vsub.f32 %v322_v17, %v443_v29  ;;  %v554_v37 = vsub.f32 %v2583_v35, %v3182_v8 }
  0x9f   : > { %v355_v58 = vsel %vm354_vm7, %v351_v49, %v353_v47  ;;  %v356_v56 = vsel %vm354_vm7, %v353_v47, %v351_v49  ;;  %2096 = vmatpush1.bf16.msra.mxu0 %v2595_v41  ;;  %v3183_v38 = vand.u32 4294901760, %v2613_v59  ;;  %v525_v32 = vand.u32 4294901760, %v524_v62 }
  0xa0   : > { %v370_v60 = vmul.f32 %v363_v63, %v355_v58  ;;  %v371_v4 = vmul.f32 %v367_v1, %v356_v56  ;;  %v518_v63 = vsub.f32 %v2559_v20, %v517_v42  ;;  %v2651_v17 = vsub.f32 %v347_v57, %v445_v19 }
  0xa1   : > { %v531_v8 = vand.u32 4294901760, %v530_v0  ;;  %v537_v57 = vand.u32 4294901760, %v536_v61  ;;  %v508_v62 = vand.u32 4294901760, %v2606_v51  ;;  %v578_v0 = vsub.f32 %v2613_v59, %v3183_v38 }
  0xa2   : > { %v449_v1 = vand.u32 4294901760, %v371_v4  ;;  %v451_v10 = vand.u32 4294901760, %v370_v60  ;;  %v377_v13 = vpop.permute.xlu1 %376  ;;  %v375_v15 = vpop.permute.xlu0 %374  ;;  %v572_v61 = vsub.f32 %v2538_v3, %v2580_v24  ;;  %v589_v38 = vand.u32 4294901760, %v2651_v17 }
  0xa3   : > { %v379_v55 = vsel %vm378_vm8, %v375_v15, %v377_v13  ;;  %v380_v14 = vsel %vm378_vm8, %v377_v13, %v375_v15  ;;  %v519_v15 = vand.u32 4294901760, %v518_v63  ;;  %v555_v63 = vand.u32 4294901760, %v554_v37 }
  0xa4   : > { %v2644_v47 = vsub.f32 %v371_v4, %v449_v1  ;;  %v395_v49 = vmul.f32 %v391_v25, %v380_v14  ;;  %v2646_v58 = vpack.c.bf16 %v449_v1, %v445_v19  ;;  %v2648_v56 = vpack.c.bf16 %v451_v10, %v447_v28 }
  0xa5   : > { %v394_v13 = vmul.f32 %v387_v26, %v379_v55  ;;  %v542_v25 = vsub.f32 %v2598_v43, %v3186_v18  ;;  %v560_v4 = vsub.f32 %v2600_v46, %v3184_v30  ;;  %v3187_v1 = vand.u32 4294901760, %v2638_v33 }
  0xa6   : > { %v2653_v29 = vand.u32 4294901760, %v395_v49  ;;  %2098 = vmatprep.subr.bf16.mxu0 %v2646_v58  ;;  %v2663_v26 = vsub.f32 %v370_v60, %v451_v10  ;;  %v601_v19 = vand.u32 4294901760, %v2644_v47  ;;  %v548_v55 = vsub.f32 %v2624_v9, %v3185_v36 }
  0xa7   : > { %2100 = vmatpush1.bf16.msra.mxu0 %v2648_v56  ;;  %v2675_v60 = vsub.f32 %v346_v53, %v447_v28  ;;  %v2677_v10 = vand.u32 4294901760, %v394_v13  ;;  %v2101_v14 = vpack.c.bf16 %v531_v8, %v519_v15  ;;  %v543_v51 = vand.u32 4294901760, %v542_v25 }
  0xa8   : > { %454 = vmatprep.subr.mxu0 %v2653_v29  ;;  %v2684_v37 = vand.u32 4294901760, %v566_v34  ;;  %v584_v30 = vsub.f32 %v2638_v33, %v3187_v1  ;;  %v3188_v53 = vand.u32 4294901760, %v2663_v26  ;;  %v2103_v28 = vpack.c.bf16 %v537_v57, %v525_v32 }
  0xa9   : > { %v561_v36 = vand.u32 4294901760, %v560_v4  ;;  %v2693_v8 = vsub.f32 %v395_v49, %v2653_v29  ;;  %v2105_v15 = vpack.c.bf16 %v555_v63, %v543_v51  ;;  %v579_v34 = vand.u32 4294901760, %v578_v0 }
  0xaa   : > { %v602_v25 = vsub.f32 %v2644_v47, %v601_v19  ;;  %v595_v18 = vand.u32 4294901760, %v2675_v60  ;;  %v549_v1 = vand.u32 4294901760, %v548_v55  ;;  %v2700_v32 = vand.u32 4294901760, %v572_v61 }
  0xab   : > { %456 = vmatpush1.msra.mxu0 %v2677_v10  ;;  %v590_v49 = vsub.f32 %v2651_v17, %v589_v38  ;;  %v608_v4 = vsub.f32 %v2663_v26, %v3188_v53  ;;  %v2709_v57 = vsub.f32 %v394_v13, %v2677_v10  ;;  %v585_v63 = vand.u32 4294901760, %v584_v30 }
  0xac   : > { %2102 = vmatprep.subr.bf16.mxu0 %v2101_v14  ;;  %509 = vmatmul.mubr.f32.vlgmr.msra.gmra.mrb[0].mxu0 %v508_v62  ;;  %v2107_v62 = vpack.c.bf16 %v561_v36, %v549_v1  ;;  %v2109_v0 = vpack.c.bf16 %v579_v34, %v2684_v37  ;;  %v603_v55 = vand.u32 4294901760, %v602_v25  ;;  %v613_v14 = vand.u32 4294901760, %v2693_v8 }
  0xad   : > { %2104 = vmatpush1.bf16.msra.mxu0 %v2103_v28  ;;  %669 = vmatprep.mubr.f32.mxu0 %v3190_v2  ;;  %v596_v61 = vsub.f32 %v2675_v60, %v595_v18  ;;  %v591_v51 = vand.u32 4294901760, %v590_v49  ;;  %v619_v28 = vand.u32 4294901760, %v2709_v57  ;;  %v609_v13 = vand.u32 4294901760, %v608_v4 }
  0xae   : > { %2106 = vmatprep.subr.bf16.mxu0 %v2105_v15  ;;  %v2111_v15 = vpack.c.bf16 %v585_v63, %v2700_v32  ;;  %v614_v36 = vsub.f32 %v2693_v8, %v613_v14  ;;  %v2117_v4 = vpack.c.bf16 %v2569_v23, %v2559_v20  ;;  %v2123_v63 = vpack.c.bf16 %v2600_v46, %v2624_v9 }
  0xaf   : > { %v2113_v53 = vpack.c.bf16 %v603_v55, %v591_v51  ;;  %v597_v30 = vand.u32 4294901760, %v596_v61  ;;  %v620_v34 = vsub.f32 %v2709_v57, %v619_v28  ;;  %v2127_v55 = vpack.c.bf16 %v2638_v33, %v2538_v3 }
  0xb0   : > { %v615_v25 = vand.u32 4294901760, %v614_v36  ;;  %v2129_v61 = vpack.c.bf16 %v2644_v47, %v2651_v17  ;;  %v2131_v51 = vpack.c.bf16 %v2663_v26, %v2675_v60  ;;  %v3209_v20 = vand.u32 4294901760, %v2624_v9  ;;  %v2077_v60 = vld [vmem:[%s3176_s1 + $0x2] ss:$8 sm:$0x3] }
  0xb1   : > { %2108 = vmatpush1.bf16.msra.mxu0 %v2107_v62  ;;  %v2115_v1 = vpack.c.bf16 %v609_v13, %v597_v30  ;;  %v621_v49 = vand.u32 4294901760, %v620_v34  ;;  %v2119_v62 = vpack.c.bf16 %v2551_v16, %v2562_v21  ;;  %v3205_v13 = vand.u32 4294901760, %v2551_v16 }
  0xb2   : > { %2110 = vmatprep.subr.bf16.mxu0 %v2109_v0  ;;  %v2125_v0 = vpack.c.bf16 %v2613_v59, %v2510_v52  ;;  %v3206_v30 = vand.u32 4294901760, %v2541_v11  ;;  %v3208_v34 = vand.u32 4294901760, %v2583_v35  ;;  %v3210_v21 = vand.u32 4294901760, %v2600_v46 }
  0xb3   : > { %v2151_v36 = vpack.c.bf16 %v3205_v13, %v523_v39  ;;  %v3211_v16 = vand.u32 4294901760, %v2613_v59 }
  0xb4   : > { %v2155_v23 = vpack.c.bf16 %v3210_v21, %v3209_v20  ;;  %v2079_v21 = vld [vmem:[%s3176_s1 + $0x5] ss:$8 sm:$0x3] }
  0xb5   : > { %2112 = vmatpush1.bf16.msra.mxu0 %v2111_v15  ;;  %v2149_v15 = vpack.c.bf16 %v529_v50, %v517_v42  ;;  %v2157_v39 = vpack.c.bf16 %v3211_v16, %v2544_v12  ;;  %v2161_v42 = vpack.c.bf16 %v601_v19, %v589_v38 }
  0xb6   : > { %2114 = vmatprep.subr.bf16.mxu0 %v2113_v53  ;;  %v2121_v53 = vpack.c.bf16 %v2583_v35, %v2598_v43 }
  0xb9   : > { %2116 = vmatpush1.bf16.msra.mxu0 %v2115_v1  ;;  %v3207_v1 = vand.u32 4294901760, %v2598_v43  ;;  %v3213_v43 = vand.u32 4294901760, %v2663_v26 }
  0xba   : > { %616 = vmatprep.subr.mxu0 %v615_v25 }
  0xbb   : > { %v2153_v25 = vpack.c.bf16 %v3208_v34, %v3207_v1  ;;  %v2163_v46 = vpack.c.bf16 %v3213_v43, %v595_v18 }
  0xbd   : > { %622 = vmatpush1.msra.mxu0 %v621_v49 }
  0xbe   : > { %2118 = vmatprep.subr.bf16.mxu0 %v2117_v4  ;;  %671 = vmatmul.mubr.f32.vlgmr.msra.gmra.mrb[0].mxu0 %v2517_v54 }
  0xbf   : > { %2120 = vmatpush1.bf16.msra.mxu0 %v2119_v62  ;;  %777 = vmatprep.mubr.f32.mxu0 %v3190_v2 }
  0xc0   : > { %2122 = vmatprep.subr.bf16.mxu0 %v2121_v53 }
  0xc3   : > { %2124 = vmatpush1.bf16.msra.mxu0 %v2123_v63  ;;  %v1151_v63 = vrot.slane %v2077_v60, %v2436_v6 }
  0xc4   : > { %2126 = vmatprep.subr.bf16.mxu0 %v2125_v0 }
  0xc7   : > { %2128 = vmatpush1.bf16.msra.mxu0 %v2127_v55 }
  0xc8   : > { %2130 = vmatprep.subr.bf16.mxu0 %v2129_v61 }
  0xcb   : > { %2132 = vmatpush1.bf16.msra.mxu0 %v2131_v51  ;;  %v1155_v51 = vrot.slane %v2077_v60, %v2438_v7 }
  0xcc   : > { %727 = vmatprep.subr.mxu0 %v2693_v8 }
  0xcf   : > { %730 = vmatpush1.msra.mxu0 %v2709_v57  ;;  %v1276_v57 = vld [vmem:[%s3178_s3] sm:$0xff] }
  0xd0   : > { %2134 = vmatprep.subr.bf16.mxu0 %v2493_v44  ;;  %780 = vmatmul.mubr.f32.vlgmr.msra.gmra.mrb[0].mxu0 %v2541_v11  ;;  %v3212_v11 = vand.u32 4294901760, %v2638_v33 }
  0xd1   : > { %2136 = vmatpush1.bf16.msra.mxu0 %v2495_v45  ;;  %868 = vmatprep.mubr.f32.mxu0 %v3190_v2 }
  0xd2   : > { %2138 = vmatprep.subr.bf16.mxu0 %v2564_v22  ;;  %v2159_v35 = vpack.c.bf16 %v3212_v11, %v2580_v24  ;;  %v2899_v11 = vld [vmem:[%s3176_s1 + $0x6] ss:$8 sm:$0x3] }
  0xd5   : > { %2140 = vmatpush1.bf16.msra.mxu0 %v2566_v27 }
  0xd6   : > { %2142 = vmatprep.subr.bf16.mxu0 %v2592_v40 }
  0xd9   : > { %2144 = vmatpush1.bf16.msra.mxu0 %v2595_v41 }
  0xda   : > { %2146 = vmatprep.subr.bf16.mxu0 %v2646_v58 }
  0xdd   : > { %2148 = vmatpush1.bf16.msra.mxu0 %v2648_v56 }
  0xde   : > { %819 = vmatprep.subr.mxu0 %v2653_v29 }
  0xe1   : > { %821 = vmatpush1.msra.mxu0 %v2677_v10 }
  0xe2   : > { %2150 = vmatprep.subr.bf16.mxu0 %v2149_v15  ;;  %872 = vmatmul.mubr.f32.vlgmr.msra.gmra.mrb[0].mxu0 %v3206_v30  ;;  %v1299_v15 = vsel %vm1297_vm9, %v1276_v57, 0 }
  0xe3   : > { %2152 = vmatpush1.bf16.msra.mxu0 %v2151_v36  ;;  %996 = vmatprep.mubr.f32.mxu0 %v3190_v2 }
  0xe4   : > { %2154 = vmatprep.subr.bf16.mxu0 %v2153_v25 }
  0xe7   : > { %2156 = vmatpush1.bf16.msra.mxu0 %v2155_v23 }
  0xe8   : > { %2158 = vmatprep.subr.bf16.mxu0 %v2157_v39 }
  0xeb   : > { %2160 = vmatpush1.bf16.msra.mxu0 %v2159_v35  ;;  %v2901_v35 = vand.u32 4294901760, %v1299_v15 }
  0xec   : > { %2162 = vmatprep.subr.bf16.mxu0 %v2161_v42 }
  0xef   : > { %2164 = vmatpush1.bf16.msra.mxu0 %v2163_v46 }
  0xf0   : > { %945 = vmatprep.subr.mxu0 %v613_v14 }
  0xf3   : > { %949 = vmatpush1.msra.mxu0 %v619_v28  ;;  %v2078_v28 = vld [vmem:[%s3176_s1 + $0x3] ss:$8 sm:$0x3] }
  0xf4   : > { %2166 = vmatprep.subr.bf16.mxu0 %v2493_v44  ;;  %998 = vmatmul.mubr.f32.vlgmr.msra.gmra.mrb[0].mxu0 %v2517_v54  ;;  %v1173_v30 = vrot.slane %v2078_v28, %v2436_v6  ;;  %v1177_v1 = vrot.slane %v2078_v28, %v2438_v7 }
  0xf5   : > { %2168 = vmatpush1.bf16.msra.mxu0 %v2495_v45  ;;  %1086 = vmatprep.mubr.f32.mxu0 %v3190_v2 }
  0xf6   : > { %2170 = vmatprep.subr.bf16.mxu0 %v2564_v22 }
  0xf9   : > { %2172 = vmatpush1.bf16.msra.mxu0 %v2566_v27 }
  0xfa   : > { %2174 = vmatprep.subr.bf16.mxu0 %v2592_v40  ;;  %v2076_v40 = vld [vmem:[%s3176_s1 + $0x1] ss:$8 sm:$0x3] }
  0xfb   : > { %v1129_v38 = vrot.slane %v2076_v40, %v2436_v6  ;;  %v1133_v47 = vrot.slane %v2076_v40, %v2438_v7  ;;  %v1197_v40 = vrot.slane %v2079_v21, %v2436_v6 }
  0xfd   : > { %2176 = vmatpush1.bf16.msra.mxu0 %v2595_v41 }
  0xfe   : > { %2178 = vmatprep.subr.bf16.mxu0 %v2646_v58 }
 0x101   : > { %2180 = vmatpush1.bf16.msra.mxu0 %v2648_v56 }
 0x102   : > { %1037 = vmatprep.subr.mxu0 %v2653_v29 }
 0x105   : > { %1039 = vmatpush1.msra.mxu0 %v2677_v10 }
 0x106   : > { %1088 = vmatmul.mubr.f32.vlgmr.msra.gmra.mrb[0].mxu0 %v2517_v54  ;;  %v1102_v54 = vld [vmem:[%s3176_s1] ss:$8 sm:$0x3] }
 0x107   : > { %v1107_v59 = vrot.slane %v1102_v54, %v2436_v6  ;;  %v1111_v9 = vrot.slane %v1102_v54, %v2438_v7 }
 0x1d9   : > { %v1089_v44 = vpop.f32.mrb[0].mxu0 }
 0x1da   : > { %v2806_v45 = vmax.f32 %v1089_v44, 0.0  ;;  %v1091_v22 = vpop.f32.mrb[1].mxu0 }
 0x1db   : > { %v2808_v50 = vmax.f32 %v1091_v22, 0.0 }
 0x1dc   : > { %1096 = vrot.lane.b32.xlu0 %v2806_v45, %s2347_s23  ;;  %v1319_v4 = vand.u32 4294901760, %v2806_v45 }
 0x1dd   : > { %1098 = vrot.lane.b32.xlu1 %v2808_v50, %s2347_s23  ;;  %v1317_v49 = vand.u32 4294901760, %v2808_v50 }
 0x1de   : > { %v2894_v16 = vsub.f32 %v2806_v45, %v1319_v4 }
 0x1df   : > { %v2889_v23 = vsub.f32 %v2808_v50, %v1317_v49 }
 0x1e0   : > { %1118 = vrot.lane.b32.xlu0 %v2806_v45, %s2346_s22 }
 0x1e1   : > { %1120 = vrot.lane.b32.xlu1 %v2808_v50, %s2346_s22 }
 0x1e4   : > { %1140 = vrot.lane.b32.xlu0 %v2806_v45, %s2348_s24 }
 0x1e5   : > { %1142 = vrot.lane.b32.xlu1 %v2808_v50, %s2348_s24 }
 0x1e8   : > { %1162 = vrot.lane.b32.xlu0 %v2806_v45, %s2349_s25 }
 0x1e9   : > { %1164 = vrot.lane.b32.xlu1 %v2808_v50, %s2349_s25 }
 0x1ec   : > { %1186 = vrot.lane.b32.xlu0 %v2806_v45, %s2350_s26 }
 0x1ed   : > { %1188 = vrot.lane.b32.xlu1 %v2808_v50, %s2350_s26 }
 0x1f0   : > { %1208 = vrot.lane.b32.xlu0 %v2806_v45, %s2351_s27 }
 0x1f1   : > { %1210 = vrot.lane.b32.xlu1 %v2808_v50, %s2351_s27 }
 0x1f4   : > { %1230 = vrot.lane.b32.xlu0 %v2806_v45, %s2352_s28 }
 0x1f5   : > { %1232 = vrot.lane.b32.xlu1 %v2808_v50, %s2352_s28 }
 0x1f8   : > { %1252 = vrot.lane.b32.xlu0 %v2806_v45, %s2354_s29 }
 0x1f9   : > { %1254 = vrot.lane.b32.xlu1 %v2808_v50, %s2354_s29 }
 0x24e   : > { %v1097_v27 = vpop.permute.xlu0 %1096 }
 0x24f   : > { %v1099_v41 = vpop.permute.xlu1 %1098 }
 0x250   : > { %v1100_v18 = vsel %vm209_vm1, %v1097_v27, %v1099_v41  ;;  %v1101_v33 = vsel %vm209_vm1, %v1099_v41, %v1097_v27 }
 0x251   : > { %v1114_v17 = vmul.f32 %v1107_v59, %v1101_v33  ;;  %v1115_v29 = vmul.f32 %v1111_v9, %v1100_v18  ;;  %v1201_v59 = vrot.slane %v2079_v21, %v2438_v7  ;;  %v1219_v9 = vrot.slane %v2899_v11, %v2436_v6 }
 0x252   : > { %v1119_v58 = vpop.permute.xlu0 %1118  ;;  %v3197_v18 = vand.u32 4294901760, %v2889_v23 }
 0x253   : > { %v1121_v56 = vpop.permute.xlu1 %1120  ;;  %v1301_v55 = vand.u32 4294901760, %v1115_v29  ;;  %v1303_v61 = vand.u32 4294901760, %v1114_v17 }
 0x254   : > { %v1122_v26 = vsel %vm232_vm0, %v1119_v58, %v1121_v56  ;;  %v1123_v19 = vsel %vm232_vm0, %v1121_v56, %v1119_v58 }
 0x255   : > { %v1136_v10 = vmul.f32 %v1129_v38, %v1123_v19  ;;  %v1137_v8 = vmul.f32 %v1133_v47, %v1122_v26  ;;  %v2910_v22 = vsub.f32 %v1114_v17, %v1303_v61  ;;  %v2919_v38 = vsub.f32 %v1115_v29, %v1301_v55  ;;  %v2081_v29 = vld [vmem:[%s3176_s1 + $0x7] ss:$8 sm:$0x3] }
 0x256   : > { %v1141_v14 = vpop.permute.xlu0 %1140  ;;  %v2922_v17 = vsub.f32 %v1299_v15, %v2901_v35 }
 0x257   : > { %v1305_v62 = vand.u32 4294901760, %v1137_v8  ;;  %v1307_v53 = vand.u32 4294901760, %v1136_v10  ;;  %v1143_v0 = vpop.permute.xlu1 %1142 }
 0x258   : > { %v1144_v13 = vsel %vm256_vm3, %v1141_v14, %v1143_v0  ;;  %v1145_v36 = vsel %vm256_vm3, %v1143_v0, %v1141_v14  ;;  %v3193_v14 = vand.u32 4294901760, %v2910_v22  ;;  %v1223_v0 = vrot.slane %v2899_v11, %v2438_v7 }
 0x259   : > { %v2879_v25 = vpack.c.bf16 %v1305_v62, %v1301_v55  ;;  %v2881_v20 = vpack.c.bf16 %v1307_v53, %v1303_v61  ;;  %v2903_v42 = vmul.f32 %v1151_v63, %v1145_v36  ;;  %v1159_v43 = vmul.f32 %v1155_v51, %v1144_v13  ;;  %v2082_v55 = vld [vmem:[%s3176_s1 + $0x10] ss:$8 sm:$0x3] }
 0x25a   : > { %v1163_v34 = vpop.permute.xlu0 %1162  ;;  %v2933_v28 = vsub.f32 %v1136_v10, %v1307_v53  ;;  %v2940_v61 = vsub.f32 %v1137_v8, %v1305_v62  ;;  %v1241_v10 = vrot.slane %v2081_v29, %v2436_v6  ;;  %v1245_v53 = vrot.slane %v2081_v29, %v2438_v7 }
 0x25b   : > { %v1165_v39 = vpop.permute.xlu1 %1164  ;;  %2182 = vmatprep.subr.bf16.mxu1 %v2879_v25  ;;  %v1309_v26 = vand.u32 4294901760, %v1159_v43  ;;  %v1311_v19 = vand.u32 4294901760, %v2903_v42  ;;  %v1263_v62 = vrot.slane %v2082_v55, %v2436_v6  ;;  %v2957_v11 = vsub.f32 %v2910_v22, %v3193_v14 }
 0x25c   : > { %v1166_v46 = vsel %vm280_vm4, %v1163_v34, %v1165_v39  ;;  %v1167_v44 = vsel %vm280_vm4, %v1165_v39, %v1163_v34  ;;  %2184 = vmatpush1.bf16.msra.mxu1 %v2881_v20  ;;  %v3189_v34 = vand.u32 4294901760, %v2922_v17  ;;  %v3195_v39 = vand.u32 4294901760, %v2919_v38 }
 0x25d   : > { %v1180_v54 = vmul.f32 %v1173_v30, %v1167_v44  ;;  %v1181_v27 = vmul.f32 %v1177_v1, %v1166_v46  ;;  %v3192_v46 = vand.u32 4294901760, %v2933_v28 }
 0x25e   : > { %v1187_v41 = vpop.permute.xlu0 %1186 }
 0x25f   : > { %v1313_v47 = vand.u32 4294901760, %v1181_v27  ;;  %v1315_v58 = vand.u32 4294901760, %v1180_v54  ;;  %v1189_v56 = vpop.permute.xlu1 %1188 }
 0x260   : > { %v1190_v60 = vsel %vm306_vm5, %v1187_v41, %v1189_v56  ;;  %v1191_v57 = vsel %vm306_vm5, %v1189_v56, %v1187_v41 }
 0x261   : > { %v1204_v63 = vmul.f32 %v1197_v40, %v1190_v60  ;;  %v1205_v51 = vmul.f32 %v1201_v59, %v1191_v57  ;;  %v2942_v13 = vpack.c.bf16 %v1313_v47, %v1309_v26  ;;  %v2944_v36 = vpack.c.bf16 %v1315_v58, %v1311_v19 }
 0x262   : > { %v1209_v15 = vpop.permute.xlu0 %1208  ;;  %v1267_v40 = vrot.slane %v2082_v55, %v2438_v7  ;;  %v2964_v41 = vsub.f32 %v1181_v27, %v1313_v47  ;;  %v3194_v60 = vand.u32 4294901760, %v2940_v61  ;;  %v2975_v57 = vsub.f32 %v1159_v43, %v1309_v26 }
 0x263   : > { %v1323_v30 = vand.u32 4294901760, %v1204_v63  ;;  %v1211_v1 = vpop.permute.xlu1 %1210  ;;  %v1321_v21 = vand.u32 4294901760, %v1205_v51  ;;  %2186 = vmatprep.subr.bf16.mxu1 %v2942_v13  ;;  %v2977_v29 = vsub.f32 %v1180_v54, %v1315_v58  ;;  %v2982_v7 = vsub.f32 %v2922_v17, %v3189_v34 }
 0x264   : > { %v1213_v8 = vsel %vm330_vm6, %v1211_v1, %v1209_v15  ;;  %v1212_v44 = vsel %vm330_vm6, %v1209_v15, %v1211_v1  ;;  %2188 = vmatpush1.bf16.msra.mxu1 %v2944_v36  ;;  %v1418_v43 = vsub.f32 %v2933_v28, %v3192_v46  ;;  %v2996_v54 = vsub.f32 %v2903_v42, %v1311_v19 }
 0x265   : > { %v2968_v6 = vpack.c.bf16 %v1321_v21, %v1317_v49  ;;  %v2972_v56 = vpack.c.bf16 %v1323_v30, %v1319_v4  ;;  %v1227_v15 = vmul.f32 %v1223_v0, %v1213_v8  ;;  %v1226_v50 = vmul.f32 %v1219_v9, %v1212_v44 }
 0x266   : > { %v1231_v59 = vpop.permute.xlu0 %1230  ;;  %v1400_v4 = vsub.f32 %v2919_v38, %v3195_v39  ;;  %v1407_v9 = vand.u32 4294901760, %v2957_v11  ;;  %v3000_v47 = vsub.f32 %v1205_v51, %v1321_v21  ;;  %v1412_v0 = vsub.f32 %v2940_v61, %v3194_v60 }
 0x267   : > { %v1233_v1 = vpop.permute.xlu1 %1232  ;;  %2190 = vmatprep.subr.bf16.mxu1 %v2968_v6  ;;  %v1435_v55 = vand.u32 4294901760, %v2964_v41  ;;  %v1441_v8 = vand.u32 4294901760, %v2977_v29  ;;  %v1325_v44 = vand.u32 4294901760, %v1227_v15  ;;  %v3012_v21 = vsub.f32 %v1204_v63, %v1323_v30 }
 0x268   : > { %v1234_v49 = vsel %vm354_vm7, %v1231_v59, %v1233_v1  ;;  %v1235_v45 = vsel %vm354_vm7, %v1233_v1, %v1231_v59  ;;  %2192 = vmatpush1.bf16.msra.mxu1 %v2972_v56  ;;  %v1327_v59 = vand.u32 4294901760, %v1226_v50  ;;  %v1459_v46 = vand.u32 4294901760, %v3000_v47 }
 0x269   : > { %v1248_v27 = vmul.f32 %v1241_v10, %v1234_v49  ;;  %v1249_v58 = vmul.f32 %v1245_v53, %v1235_v45  ;;  %v1423_v10 = vand.u32 4294901760, %v2975_v57  ;;  %v1401_v45 = vand.u32 4294901760, %v1400_v4 }
 0x26a   : > { %v1253_v26 = vpop.permute.xlu0 %1252  ;;  %v1436_v33 = vsub.f32 %v2964_v41, %v1435_v55  ;;  %v1429_v14 = vand.u32 4294901760, %v2996_v54  ;;  %v1442_v63 = vsub.f32 %v2977_v29, %v1441_v8  ;;  %v1413_v30 = vand.u32 4294901760, %v1412_v0 }
 0x26b   : > { %v1331_v42 = vand.u32 4294901760, %v1248_v27  ;;  %v1255_v19 = vpop.permute.xlu1 %1254  ;;  %v1329_v1 = vand.u32 4294901760, %v1249_v58  ;;  %v1465_v4 = vand.u32 4294901760, %v3012_v21 }
 0x26c   : > { %v1256_v51 = vsel %vm378_vm8, %v1253_v26, %v1255_v19  ;;  %v1257_v53 = vsel %vm378_vm8, %v1255_v19, %v1253_v26  ;;  %v3027_v26 = vsub.f32 %v1227_v15, %v1325_v44  ;;  %v3029_v19 = vsub.f32 %v1226_v50, %v1327_v59 }
 0x26d   : > { %v1270_v11 = vmul.f32 %v1263_v62, %v1256_v51  ;;  %v1271_v49 = vmul.f32 %v1267_v40, %v1257_v53  ;;  %v3014_v34 = vpack.c.bf16 %v1329_v1, %v1325_v44  ;;  %v3016_v2 = vpack.c.bf16 %v1331_v42, %v1327_v59 }
 0x26e   : > { %v3021_v60 = vsub.f32 %v1249_v58, %v1329_v1  ;;  %v1419_v62 = vand.u32 4294901760, %v1418_v43  ;;  %v1424_v40 = vsub.f32 %v2975_v57, %v1423_v10  ;;  %v3035_v1 = vsub.f32 %v1248_v27, %v1331_v42 }
 0x26f   : > { %v1333_v39 = vand.u32 4294901760, %v1271_v49  ;;  %v1335_v5 = vand.u32 4294901760, %v1270_v11  ;;  %2194 = vmatprep.subr.bf16.mxu1 %v3014_v34  ;;  %v1437_v0 = vand.u32 4294901760, %v1436_v33  ;;  %v1460_v43 = vsub.f32 %v3000_v47, %v1459_v46 }
 0x270   : > { %2196 = vmatpush1.bf16.msra.mxu1 %v3016_v2  ;;  %v1390_v15 = vand.u32 4294901760, %v2982_v7  ;;  %v1448_v50 = vsub.f32 %v2889_v23, %v3197_v18  ;;  %v1430_v27 = vsub.f32 %v2996_v54, %v1429_v14  ;;  %v2201_v44 = vpack.c.bf16 %v1413_v30, %v1401_v45 }
 0x271   : > { %v3033_v58 = vpack.c.bf16 %v2479_v31, %v1333_v39  ;;  %v3038_v51 = vpack.c.bf16 %v2504_v48, %v1335_v5  ;;  %v3041_v53 = vsub.f32 %v1271_v49, %v1333_v39  ;;  %v1483_v31 = vand.u32 4294901760, %v3021_v60 }
 0x272   : > { %v2203_v48 = vpack.c.bf16 %v1419_v62, %v1407_v9  ;;  %v1425_v42 = vand.u32 4294901760, %v1424_v40  ;;  %v1466_v33 = vsub.f32 %v3012_v21, %v1465_v4  ;;  %v1477_v39 = vand.u32 4294901760, %v3029_v19 }
 0x273   : > { %3214 = vst [vmem:[#allocation6_spill] sm:$0xff] %v3033_v58  ;;  %3215 = vst [vmem:[#allocation7_spill] sm:$0xff] %v3038_v51  ;;  %2198 = vmatprep.subr.bf16.mxu1 %v3033_v58  ;;  %v1443_v59 = vand.u32 4294901760, %v1442_v63  ;;  %v1471_v7 = vand.u32 4294901760, %v3027_v26  ;;  %v1489_v49 = vand.u32 4294901760, %v3035_v1  ;;  %v3055_v24 = vsub.f32 %v1270_v11, %v1335_v5 }
 0x274   : > { %2200 = vmatpush1.bf16.msra.mxu1 %v3038_v51  ;;  %v2205_v18 = vpack.c.bf16 %v1437_v0, %v1425_v42  ;;  %v1461_v12 = vand.u32 4294901760, %v1460_v43  ;;  %v1484_v45 = vsub.f32 %v3021_v60, %v1483_v31  ;;  %v1495_v9 = vand.u32 4294901760, %v3041_v53 }
 0x275   : > { %2202 = vmatprep.subr.bf16.mxu1 %v2201_v44  ;;  %v3216_v30 = vand.u32 4294901760, %v2919_v38  ;;  %v3217_v62 = vand.u32 4294901760, %v2940_v61  ;;  %v3218_v63 = vand.u32 4294901760, %v2910_v22  ;;  %v3219_v51 = vand.u32 4294901760, %v2933_v28 }
 0x276   : > { %v3071_v11 = vpack.c.bf16 %v1435_v55, %v1423_v10  ;;  %v3073_v5 = vpack.c.bf16 %v1441_v8, %v1429_v14  ;;  %v3220_v0 = vand.u32 4294901760, %v2889_v23  ;;  %v3221_v44 = vand.u32 4294901760, %v2894_v16 }
 0x277   : > { %v3063_v40 = vpack.c.bf16 %v3217_v62, %v3216_v30  ;;  %v3069_v58 = vpack.c.bf16 %v3219_v51, %v3218_v63  ;;  %1391 = vmatmul.mubr.f32.vlgmr.msra.gmra.mrb[0].mxu1 %v1390_v15  ;;  %v1431_v30 = vand.u32 4294901760, %v1430_v27  ;;  %v3223_v63 = vmov 0.0  }
 0x278   : > { %v3077_v43 = vpack.c.bf16 %v1459_v46, %v3220_v0  ;;  %v3081_v42 = vpack.c.bf16 %v1465_v4, %v3221_v44  ;;  %2204 = vmatpush1.bf16.msra.mxu1 %v2203_v48  ;;  %v3222_v62 = vmov %v3221_v44  ;;  %1561 = vmatprep.mubr.f32.mxu1 %v3223_v63  ;;  %v3087_v55 = vpack.c.bf16 %v1483_v31, %v1471_v7 }
 0x279   : > { %v1454_v51 = vsub.f32 %v2894_v16, %v3222_v62  ;;  %2206 = vmatprep.subr.bf16.mxu1 %v2205_v18  ;;  %v1449_v14 = vand.u32 4294901760, %v1448_v50  ;;  %v1472_v8 = vsub.f32 %v3027_v26, %v1471_v7  ;;  %v3090_v46 = vpack.c.bf16 %v1489_v49, %v1477_v39 }
 0x27a   : > { %v1490_v10 = vsub.f32 %v3035_v1, %v1489_v49  ;;  %v1501_v4 = vand.u32 4294901760, %v3055_v24  ;;  %v2207_v15 = vpack.c.bf16 %v1443_v59, %v1431_v30  ;;  %v1467_v27 = vand.u32 4294901760, %v1466_v33 }
 0x27b   : > { %v2209_v48 = vpack.c.bf16 %v1461_v12, %v1449_v14  ;;  %v1485_v0 = vand.u32 4294901760, %v1484_v45  ;;  %v1496_v44 = vsub.f32 %v3041_v53, %v1495_v9  ;;  %v1478_v31 = vsub.f32 %v3029_v19, %v1477_v39 }
 0x27c   : > { %2208 = vmatpush1.bf16.msra.mxu1 %v2207_v15  ;;  %v1455_v18 = vand.u32 4294901760, %v1454_v51  ;;  %v1473_v50 = vand.u32 4294901760, %v1472_v8  ;;  %v1502_v7 = vsub.f32 %v3055_v24, %v1501_v4  ;;  %v1491_v62 = vand.u32 4294901760, %v1490_v10 }
 0x27d   : > { %2210 = vmatprep.subr.bf16.mxu1 %v2209_v48  ;;  %v1497_v33 = vand.u32 4294901760, %v1496_v44  ;;  %v1479_v12 = vand.u32 4294901760, %v1478_v31  ;;  %v2221_v51 = vpack.c.bf16 %v2940_v61, %v2919_v38  ;;  %v2223_v8 = vpack.c.bf16 %v2933_v28, %v2910_v22 }
 0x27e   : > { %v2211_v49 = vpack.c.bf16 %v1467_v27, %v1455_v18  ;;  %v2213_v59 = vpack.c.bf16 %v1485_v0, %v1473_v50  ;;  %v1503_v30 = vand.u32 4294901760, %v1502_v7  ;;  %v2225_v10 = vpack.c.bf16 %v2964_v41, %v2975_v57  ;;  %v3227_v41 = vld [vmem:[#allocation4_spill] sm:$0xff] }
 0x27f   : > { %v2215_v45 = vpack.c.bf16 %v1491_v62, %v1479_v12  ;;  %v2217_v14 = vpack.c.bf16 %v2684_v37, %v1497_v33  ;;  %v2227_v37 = vpack.c.bf16 %v2977_v29, %v2996_v54  ;;  %v2231_v22 = vpack.c.bf16 %v3012_v21, %v2894_v16 }
 0x280   : > { %2212 = vmatpush1.bf16.msra.mxu1 %v2211_v49  ;;  %v2219_v39 = vpack.c.bf16 %v2700_v32, %v1503_v30  ;;  %v2229_v32 = vpack.c.bf16 %v3000_v47, %v2889_v23  ;;  %v2233_v38 = vpack.c.bf16 %v3021_v60, %v3027_v26  ;;  %v2235_v28 = vpack.c.bf16 %v3035_v1, %v3029_v19 }
 0x281   : > { %2214 = vmatprep.subr.bf16.mxu1 %v2213_v59  ;;  %v2237_v61 = vpack.c.bf16 %v2510_v52, %v3041_v53  ;;  %v2239_v23 = vpack.c.bf16 %v2538_v3, %v3055_v24  ;;  %v3224_v52 = vld [vmem:[#allocation6_spill] sm:$0xff]  ;;  %v3225_v3 = vld [vmem:[#allocation7_spill] sm:$0xff]  ;;  %v3226_v16 = vand.u32 4294901760, %v2922_v17  ;;  %v2277_v60 = vpack.c.bf16 %v3227_v41, %v1495_v9 }
 0x284   : > { %2216 = vmatpush1.bf16.msra.mxu1 %v2215_v45 }
 0x285   : > { %2218 = vmatprep.subr.bf16.mxu1 %v2217_v14 }
 0x288   : > { %2220 = vmatpush1.bf16.msra.mxu1 %v2219_v39 }
 0x289   : > { %2222 = vmatprep.subr.bf16.mxu1 %v2221_v51 }
 0x28b   : > { %1563 = vmatmul.mubr.f32.vlgmr.msra.gmra.mrb[0].mxu1 %v2901_v35 }
 0x28c   : > { %2224 = vmatpush1.bf16.msra.mxu1 %v2223_v8  ;;  %1673 = vmatprep.mubr.f32.mxu1 %v3223_v63 }
 0x28d   : > { %2226 = vmatprep.subr.bf16.mxu1 %v2225_v10 }
 0x290   : > { %2228 = vmatpush1.bf16.msra.mxu1 %v2227_v37 }
 0x291   : > { %2230 = vmatprep.subr.bf16.mxu1 %v2229_v32 }
 0x294   : > { %2232 = vmatpush1.bf16.msra.mxu1 %v2231_v22 }
 0x295   : > { %2234 = vmatprep.subr.bf16.mxu1 %v2233_v38 }
 0x298   : > { %2236 = vmatpush1.bf16.msra.mxu1 %v2235_v28 }
 0x299   : > { %2238 = vmatprep.subr.bf16.mxu1 %v2237_v61 }
 0x29c   : > { %2240 = vmatpush1.bf16.msra.mxu1 %v2239_v23 }
 0x29d   : > { %2242 = vmatprep.subr.bf16.mxu1 %v2879_v25 }
 0x29f   : > { %1676 = vmatmul.mubr.f32.vlgmr.msra.gmra.mrb[0].mxu1 %v2922_v17  ;;  %v3228_v17 = vld [vmem:[#allocation5_spill] sm:$0xff] }
 0x2a0   : > { %2244 = vmatpush1.bf16.msra.mxu1 %v2881_v20  ;;  %1766 = vmatprep.mubr.f32.mxu1 %v3223_v63  ;;  %v2279_v57 = vpack.c.bf16 %v3228_v17, %v1501_v4 }
 0x2a1   : > { %2246 = vmatprep.subr.bf16.mxu1 %v2942_v13 }
 0x2a4   : > { %2248 = vmatpush1.bf16.msra.mxu1 %v2944_v36 }
 0x2a5   : > { %2250 = vmatprep.subr.bf16.mxu1 %v2968_v6 }
 0x2a8   : > { %2252 = vmatpush1.bf16.msra.mxu1 %v2972_v56 }
 0x2a9   : > { %2254 = vmatprep.subr.bf16.mxu1 %v3014_v34 }
 0x2ac   : > { %2256 = vmatpush1.bf16.msra.mxu1 %v3016_v2 }
 0x2ad   : > { %2258 = vmatprep.subr.bf16.mxu1 %v3224_v52 }
 0x2b0   : > { %2260 = vmatpush1.bf16.msra.mxu1 %v3225_v3 }
 0x2b1   : > { %2262 = vmatprep.subr.bf16.mxu1 %v3063_v40 }
 0x2b3   : > { %1770 = vmatmul.mubr.f32.vlgmr.msra.gmra.mrb[0].mxu1 %v3226_v16 }
 0x2b4   : > { %2264 = vmatpush1.bf16.msra.mxu1 %v3069_v58  ;;  %1900 = vmatprep.mubr.f32.mxu1 %v3223_v63 }
 0x2b5   : > { %2266 = vmatprep.subr.bf16.mxu1 %v3071_v11 }
 0x2b8   : > { %2268 = vmatpush1.bf16.msra.mxu1 %v3073_v5 }
 0x2b9   : > { %2270 = vmatprep.subr.bf16.mxu1 %v3077_v43 }
 0x2bc   : > { %2272 = vmatpush1.bf16.msra.mxu1 %v3081_v42 }
 0x2bd   : > { %2274 = vmatprep.subr.bf16.mxu1 %v3087_v55 }
 0x2c0   : > { %2276 = vmatpush1.bf16.msra.mxu1 %v3090_v46 }
 0x2c1   : > { %2278 = vmatprep.subr.bf16.mxu1 %v2277_v60 }
 0x2c4   : > { %2280 = vmatpush1.bf16.msra.mxu1 %v2279_v57 }
 0x2c5   : > { %2282 = vmatprep.subr.bf16.mxu1 %v2879_v25 }
 0x2c7   : > { %1902 = vmatmul.mubr.f32.vlgmr.msra.gmra.mrb[0].mxu1 %v2901_v35 }
 0x2c8   : > { %2284 = vmatpush1.bf16.msra.mxu1 %v2881_v20  ;;  %1992 = vmatprep.mubr.f32.mxu1 %v3223_v63 }
 0x2c9   : > { %2286 = vmatprep.subr.bf16.mxu1 %v2942_v13 }
 0x2cc   : > { %2288 = vmatpush1.bf16.msra.mxu1 %v2944_v36 }
 0x2cd   : > { %2290 = vmatprep.subr.bf16.mxu1 %v2968_v6 }
 0x2d0   : > { %2292 = vmatpush1.bf16.msra.mxu1 %v2972_v56 }
 0x2d1   : > { %2294 = vmatprep.subr.bf16.mxu1 %v3014_v34 }
 0x2d4   : > { %2296 = vmatpush1.bf16.msra.mxu1 %v3016_v2 }
 0x2d5   : > { %2298 = vmatprep.subr.bf16.mxu1 %v3224_v52 }
 0x2d8   : > { %2300 = vmatpush1.bf16.msra.mxu1 %v3225_v3 }
 0x2db   : > { %1994 = vmatmul.mubr.f32.vlgmr.msra.gmra.mrb[0].mxu1 %v2901_v35 }
 0x3ae   : > { %v1995_v24 = vpop.f32.mrb[0].mxu1 }
 0x3af   : > { %v2000_v25 = vmax.f32 %v1995_v24, 0.0  ;;  %v1997_v20 = vpop.f32.mrb[1].mxu1 }
 0x3b0   : > { %v2001_v13 = vmax.f32 %v1997_v20, 0.0 }
 0x3b1   : > { %2002 = vst [vmem:[%s199_s30] sm:$0xff] %v2000_v25 }
 0x3b2   : > { %2003 = vst [vmem:[%s199_s30 + $0x8] sm:$0xff] %v2001_v13 }
 0x3b3 PF: > { %s14_s15 = sadd.s32 1, %s2344_s15  }
 0x3b4   : > { %p11_p4 = scmp.ge.s32.totalorder %s14_s15, 4  }
 0x3b6   :  { %13 = sbr.rel (!%p11_p4) target bundleno = 1 (0x1), region = 73 }

</bundles_post_ra>
